<compile_context>
chip_gen: v7x
topology: tpu7x:2x2x1
jax: 0.10.0
libtpu: 0.0.40
codegen_flags: <defaults>
</compile_context>

<pallas_src>
import functools

import jax
import jax.numpy as jnp
from jax.experimental import pallas as pl
from jax.experimental.pallas import tpu as pltpu


_SMALL_INPUT_BYTES = 256 * 1024   # below this, let XLA fuse the trivial op


def _sublane_align(itemsize):
    # 32-bit: 8 rows/vreg; 16-bit: 16; 8-bit: 32 (sub-32-bit packs sublanes).
    return 8 * max(1, 4 // itemsize)


def _vmem_budget():
    """(vmem_limit_bytes, usable block budget) derived from the chip."""
    cap = 128 * 1024 * 1024
    try:
        info = pltpu.get_tpu_info()
        cap = int(getattr(info, "vmem_capacity_bytes", cap))
    except Exception:
        pass
    # ~3/4 of physical, clamped: 96 MiB on v5e/v6e (128 MiB), 48 MiB on v7x (64 MiB).
    limit = max(32 * 1024 * 1024, min(96 * 1024 * 1024, (cap * 3) // 4))
    budget = (limit * 3) // 4   # headroom for compiler scratch / misc buffers
    return limit, budget


def _fusion_ref(x, method):
    """Plain-XLA reference / fallback (also the tiny-input fast path)."""
    if method == 'cat':
        return jnp.concatenate([x[m] for m in range(x.shape[0])], axis=1)
    if method == 'max':
        return jnp.max(x, axis=0)
    if method == 'sum':
        return jnp.sum(x, axis=0)
    return jnp.prod(x, axis=0)


def _reduce_kernel(x_ref, o_ref, *, M, method, acc_dtype):
    # Streaming per-modality accumulation: only one (TB, TD) accumulator plus
    # one converted slab live at a time (no full-block f32 materialization).
    acc = x_ref[0].astype(acc_dtype)
    for m in range(1, M):
        xm = x_ref[m].astype(acc_dtype)
        if method == 'max':
            acc = jnp.maximum(acc, xm)
        elif method == 'sum':
            acc = acc + xm
        else:  # 'prod'
            acc = acc * xm
    o_ref[...] = acc.astype(o_ref.dtype)


def _cat_kernel(x_ref, o_ref, *, M, D):
    # Lane-dense (TB, M*D) output slab per step → unmasked full-width stores.
    for m in range(M):
        o_ref[:, m * D:(m + 1) * D] = x_ref[m]


def fusion(x, method, *, force_pallas=False, block_budget_bytes=None):
    if method not in ('cat', 'max', 'sum', 'prod'):
        raise ValueError(f"unknown fusion method: {method}")

    M, B, D = x.shape
    isz = jnp.dtype(x.dtype).itemsize
    total_bytes = M * B * D * isz

    if not force_pallas and total_bytes < _SMALL_INPUT_BYTES:
        return _fusion_ref(x, method)   # launch + 1 grid step would dominate

    vmem_limit, budget = _vmem_budget()
    if block_budget_bytes is not None:
        budget = block_budget_bytes
    align = _sublane_align(isz)

    # ------------------------------ 'cat' ------------------------------
    if method == 'cat':
        # Double-buffered footprint per batch row: 2*in (M*D) + 2*out (M*D).
        per_row = 4 * M * D * isz
        tb = budget // per_row
        if tb >= B:
            tb = B
        elif tb >= align:
            tb = (tb // align) * align
        else:
            # TODO(synk): pathological M*D — a DMA-only HBM→HBM variant would
            # avoid the VMEM ceiling; fall back to the fused XLA op instead.
            return _fusion_ref(x, method)

        grid = (pl.cdiv(B, tb),)
        return pl.pallas_call(
            functools.partial(_cat_kernel, M=M, D=D),
            out_shape=jax.ShapeDtypeStruct((B, M * D), x.dtype),
            grid=grid,
            in_specs=[pl.BlockSpec((M, tb, D), lambda b: (0, b, 0))],
            out_specs=pl.BlockSpec((tb, M * D), lambda b: (b, 0)),
            compiler_params=pltpu.CompilerParams(
                dimension_semantics=("parallel",),
                vmem_limit_bytes=vmem_limit),
            cost_estimate=pl.CostEstimate(
                flops=0, transcendentals=0, bytes_accessed=2 * total_bytes),
        )(x)

    # ------------------------- 'max'/'sum'/'prod' -----------------------
    acc_dtype = x.dtype
    if (method in ('sum', 'prod')
            and jnp.issubdtype(x.dtype, jnp.floating) and isz < 4):
        acc_dtype = jnp.float32   # f32 accumulation for sub-32-bit floats

    # Double-buffered footprint per batch row: 2*in (M*D) + 2*out (D).
    per_row = 2 * (M + 1) * D * isz
    tb = budget // per_row
    if tb >= B:
        tb, td = B, D
    elif tb >= align:
        tb, td = (tb // align) * align, D
    else:
        # Even the minimal batch tile over full D doesn't fit: tile D too.
        per_col = 2 * (M + 1) * align * isz
        td = ((budget // per_col) // 128) * 128
        if D % 128 != 0 or td < 128:
            # TODO(synk): pathological M*D with unaligned D; fall back to XLA.
            return _fusion_ref(x, method)
        tb, td = align, min(td, D)

    grid = (pl.cdiv(B, tb), pl.cdiv(D, td))
    return pl.pallas_call(
        functools.partial(_reduce_kernel, M=M, method=method,
                          acc_dtype=acc_dtype),
        out_shape=jax.ShapeDtypeStruct((B, D), x.dtype),
        grid=grid,
        in_specs=[pl.BlockSpec((M, tb, td), lambda b, d: (0, b, d))],
        out_specs=pl.BlockSpec((tb, td), lambda b, d: (b, d)),
        compiler_params=pltpu.CompilerParams(
            dimension_semantics=("parallel", "parallel"),
            vmem_limit_bytes=vmem_limit),
        cost_estimate=pl.CostEstimate(
            flops=max(M - 1, 0) * B * D, transcendentals=0,
            bytes_accessed=total_bytes + B * D * isz),
    )(x)


if __name__ == "__main__":
    key = jax.random.PRNGKey(0)

    # ---- f32, all four methods (whole batch in one block) ----
    M, B, D = 4, 64, 256
    # Modest values so 'prod' stays well-conditioned.
    x = 0.5 * jax.random.normal(key, (M, B, D), dtype=jnp.float32) + 1.0
    refs = {
        'max': jnp.max(x, axis=0),
        'sum': jnp.sum(x, axis=0),
        'prod': jnp.prod(x, axis=0),
        'cat': jnp.concatenate([x[m] for m in range(M)], axis=1),
    }
    for method, ref in refs.items():
        out = jax.block_until_ready(fusion(x, method, force_pallas=True))
        assert out.shape == ref.shape, method
        assert jnp.allclose(out, ref, rtol=1e-5, atol=1e-5), method

    # ---- bf16, ragged batch (B % TB != 0) and multi-step grid ----
    Mb, Bb, Db = 3, 20, 128
    xb = (0.25 * jax.random.normal(jax.random.PRNGKey(1), (Mb, Bb, Db),
                                   dtype=jnp.float32) + 1.0).astype(jnp.bfloat16)
    for method in ('sum', 'prod', 'max'):
        ref = _fusion_ref(xb.astype(jnp.float32), method).astype(jnp.bfloat16)
        out = jax.block_until_ready(
            fusion(xb, method, force_pallas=True, block_budget_bytes=32 * 1024))
        assert out.shape == ref.shape, method
        assert jnp.allclose(out.astype(jnp.float32), ref.astype(jnp.float32),
                            rtol=2e-2, atol=2e-2), method

    # ---- D-tiled reduce path (tiny budget forces batch+feature tiling) ----
    Md, Bd, Dd = 2, 8, 256
    xd = jax.random.normal(jax.random.PRNGKey(2), (Md, Bd, Dd), dtype=jnp.float32)
    ref_d = jnp.sum(xd, axis=0)
    out_d = jax.block_until_ready(
        fusion(xd, 'sum', force_pallas=True, block_budget_bytes=25_000))
    assert jnp.allclose(out_d, ref_d, rtol=1e-5, atol=1e-5)

    # ---- 'cat' with a ragged (partial) last batch tile ----
    Mc, Bc, Dc = 2, 20, 128
    xc = jax.random.normal(jax.random.PRNGKey(3), (Mc, Bc, Dc), dtype=jnp.float32)
    ref_c = jnp.concatenate([xc[m] for m in range(Mc)], axis=1)
    out_c = jax.block_until_ready(
        fusion(xc, 'cat', force_pallas=True, block_budget_bytes=32 * 1024))
    assert jnp.allclose(out_c, ref_c)

    print("KERNEL_OK")
</pallas_src>

<mosaic_0001>
module attributes {stable_mosaic.version = 11 : i64} {
  func.func @_reduce_kernel(%arg0: i32, %arg1: i32, %arg2: memref<4x64x256xf32, #tpu.memory_space<vmem>>, %arg3: memref<64x256xf32, #tpu.memory_space<vmem>>) attributes {dimension_semantics = [#tpu.dimension_semantics<parallel>, #tpu.dimension_semantics<parallel>], iteration_bounds = array<i64: 1, 1>, scalar_prefetch = 0 : i64, scratch_operands = 0 : i64, tpu.core_type = #tpu.core_type<tc>, window_params = [{transform_indices = @transform_0, window_bounds = array<i64: 4, 64, 256>}, {transform_indices = @transform_1, window_bounds = array<i64: 64, 256>}]} {
    %c0 = arith.constant 0 : index
    %c0_0 = arith.constant 0 : index
    %c0_1 = arith.constant 0 : index
    %0 = vector.load %arg2[%c0, %c0_0, %c0_1] : memref<4x64x256xf32, #tpu.memory_space<vmem>>, vector<1x64x256xf32>
    %1 = vector.shape_cast %0 : vector<1x64x256xf32> to vector<64x256xf32>
    %c1 = arith.constant 1 : index
    %c0_2 = arith.constant 0 : index
    %c0_3 = arith.constant 0 : index
    %2 = vector.load %arg2[%c1, %c0_2, %c0_3] : memref<4x64x256xf32, #tpu.memory_space<vmem>>, vector<1x64x256xf32>
    %3 = vector.shape_cast %2 : vector<1x64x256xf32> to vector<64x256xf32>
    %4 = arith.maximumf %1, %3 : vector<64x256xf32>
    %c2 = arith.constant 2 : index
    %c0_4 = arith.constant 0 : index
    %c0_5 = arith.constant 0 : index
    %5 = vector.load %arg2[%c2, %c0_4, %c0_5] : memref<4x64x256xf32, #tpu.memory_space<vmem>>, vector<1x64x256xf32>
    %6 = vector.shape_cast %5 : vector<1x64x256xf32> to vector<64x256xf32>
    %7 = arith.maximumf %4, %6 : vector<64x256xf32>
    %c3 = arith.constant 3 : index
    %c0_6 = arith.constant 0 : index
    %c0_7 = arith.constant 0 : index
    %8 = vector.load %arg2[%c3, %c0_6, %c0_7] : memref<4x64x256xf32, #tpu.memory_space<vmem>>, vector<1x64x256xf32>
    %9 = vector.shape_cast %8 : vector<1x64x256xf32> to vector<64x256xf32>
    %10 = arith.maximumf %7, %9 : vector<64x256xf32>
    %c0_8 = arith.constant 0 : index
    %c0_9 = arith.constant 0 : index
    %11 = vector.load %arg3[%c0_8, %c0_9] : memref<64x256xf32, #tpu.memory_space<vmem>>, vector<64x256xf32>
    tpu.vector_store %arg3[%c0_8, %c0_9], %10 {strides = array<i32>} : memref<64x256xf32, #tpu.memory_space<vmem>>, vector<64x256xf32>,
    return
  }
  func.func @transform_0(%arg0: i32, %arg1: i32) -> (i32, i32, i32) {
    %c0_i32 = arith.constant 0 : i32
    %c0_i32_0 = arith.constant 0 : i32
    return %c0_i32, %arg0, %arg1 : i32, i32, i32
  }
  func.func @transform_1(%arg0: i32, %arg1: i32) -> (i32, i32) {
    %c0_i32 = arith.constant 0 : i32
    return %arg0, %arg1 : i32, i32
  }
}

</mosaic_0001>

<bundles_post_ra>
// kernel: tpu_custom_call.1
= control target key start
LH: loop header
LB: loop body
LE: loop exit
PB: predicated region body
PF: predicated region fallthrough
CT: control target
= control target key end

     0   :  { %6 = vsyncpa [#allocation3], 0  ;;  %s267_s0 = inlined_call_operand.hbm [shape: f32[4,64,256], index: 0, kind: input, shape index: {}]   ;;  %s268_s1 = inlined_call_operand.hbm [shape: f32[64,256], index: 1, kind: output, shape index: {}]  }
   0x1   :  { %7 = vsyncpa [#allocation4], 0  ;;  %s223_s6 = smov [#allocation2]   ;;  %s175_s10 = scalar_lea.hbm %s267_s0, 8192 }
   0x2   :  { %s13_s7 = sshll.u32 %s223_s6, 4  ;;  %p176_p0 = scmp.ne.s32.totalorder %s267_s0, %s175_s10  ;;  %s14_s7 = int_to_ptr.vmem [resolvable:$true] %s13_s7 }
   0x3   :  { %p179_p1 = scmp.lt.u32.totalorder %s175_s10, %s267_s0 }
   0x5   :  { %p181_p2 = pnand %p179_p1, %p176_p0 }
   0x7   :  { %184 = shalt.err (!%p181_p2)
}
   0x8   :  { %s185_s15 = scalar_lea.vmem %s14_s7, 8192  ;;  %p190_p4 = scmp.lt.s32.totalorder %s14_s7, %s14_s7 }
   0x9   :  { %p186_p3 = scmp.ne.s32.totalorder %s14_s7, %s185_s15  ;;  %p191_p5 = scmp.lt.s32.totalorder %s185_s15, %s185_s15 }
   0xb   :  { %p192_p6 = por %p191_p5, %p190_p4 }
   0xd   :  { %p193_p7 = pnand %p192_p6, %p186_p3 }
   0xf   :  { %196 = shalt.err (!%p193_p7)
}
  0x10   :  { %s224_s16 = smov 256   ;;  %s225_s17 = smov 16  }
  0x11   :  { %19 = dma.hbm_to_vmem [thread:$0]  %s267_s0, 8192, %s14_s7, [#allocation3], %s224_s16, %s224_s16, %s225_s17  }
  0x12   :  { %219 = dma.done.wait [#allocation3], 8192  }
  0x13   :  { %220 = vsyncadd [#allocation3], 4294959104  ;;  %v23_v0 = vld [vmem:[#allocation2] sm:$0xff]  ;;  %v24_v4 = vld [vmem:[#allocation2 + $0x8] sm:$0xff]  ;;  %s226_s0 = smov [#allocation5]  }
  0x14   :  { %v40_v1 = vld [vmem:[#allocation2 + $0x80] sm:$0xff]  ;;  %v41_v5 = vld [vmem:[#allocation2 + $0x88] sm:$0xff]  ;;  %v25_v9 = vld [vmem:[#allocation2 + $0x10] sm:$0xff]  ;;  %s159_s20 = sshll.u32 %s226_s0, 4  ;;  %s160_s20 = int_to_ptr.vmem [resolvable:$true] %s159_s20 }
  0x15   :  { %v73_v2 = vld [vmem:[#allocation2 + $0x100] sm:$0xff]  ;;  %v56_v3 = vmax.f32 %v23_v0, %v40_v1  ;;  %v57_v7 = vmax.f32 %v24_v4, %v41_v5  ;;  %v74_v8 = vld [vmem:[#allocation2 + $0x108] sm:$0xff]  ;;  %v42_v12 = vld [vmem:[#allocation2 + $0x90] sm:$0xff]  ;;  %s197_s21 = scalar_lea.vmem %s160_s20, 2048  ;;  %p202_p9 = scmp.lt.s32.totalorder %s160_s20, %s160_s20 }
  0x16   :  { %v106_v6 = vld [vmem:[#allocation2 + $0x180] sm:$0xff]  ;;  %v107_v11 = vld [vmem:[#allocation2 + $0x188] sm:$0xff]  ;;  %v75_v13 = vld [vmem:[#allocation2 + $0x110] sm:$0xff]  ;;  %v58_v15 = vmax.f32 %v25_v9, %v42_v12  ;;  %p198_p8 = scmp.ne.s32.totalorder %s160_s20, %s197_s21  ;;  %p203_p10 = scmp.lt.s32.totalorder %s197_s21, %s197_s21 }
  0x17   :  { %v89_v10 = vmax.f32 %v56_v3, %v73_v2  ;;  %v90_v14 = vmax.f32 %v57_v7, %v74_v8  ;;  %v26_v16 = vld [vmem:[#allocation2 + $0x18] sm:$0xff]  ;;  %v108_v20 = vld [vmem:[#allocation2 + $0x190] sm:$0xff]  ;;  %v27_v22 = vld [vmem:[#allocation2 + $0x20] sm:$0xff] }
  0x18   :  { %v43_v17 = vld [vmem:[#allocation2 + $0x98] sm:$0xff]  ;;  %v44_v23 = vld [vmem:[#allocation2 + $0xa0] sm:$0xff]  ;;  %v91_v25 = vmax.f32 %v58_v15, %v75_v13  ;;  %v28_v29 = vld [vmem:[#allocation2 + $0x28] sm:$0xff]  ;;  %p204_p11 = por %p203_p10, %p202_p9 }
  0x19   :  { %v76_v18 = vld [vmem:[#allocation2 + $0x118] sm:$0xff]  ;;  %v122_v19 = vmax.f32 %v89_v10, %v106_v6  ;;  %v59_v21 = vmax.f32 %v26_v16, %v43_v17  ;;  %v123_v24 = vmax.f32 %v90_v14, %v107_v11  ;;  %v60_v27 = vmax.f32 %v27_v22, %v44_v23  ;;  %v77_v28 = vld [vmem:[#allocation2 + $0x120] sm:$0xff]  ;;  %v45_v32 = vld [vmem:[#allocation2 + $0xa8] sm:$0xff] }
  0x1a   :  { %v109_v26 = vld [vmem:[#allocation2 + $0x198] sm:$0xff]  ;;  %v110_v31 = vld [vmem:[#allocation2 + $0x1a0] sm:$0xff]  ;;  %v78_v33 = vld [vmem:[#allocation2 + $0x128] sm:$0xff]  ;;  %v124_v34 = vmax.f32 %v91_v25, %v108_v20  ;;  %v61_v36 = vmax.f32 %v28_v29, %v45_v32  ;;  %p205_p12 = pnand %p204_p11, %p198_p8 }
  0x1b   :  { %138 = vst [vmem:[#allocation5] sm:$0xff] %v122_v19  ;;  %v92_v30 = vmax.f32 %v59_v21, %v76_v18  ;;  %139 = vst [vmem:[#allocation5 + $0x8] sm:$0xff] %v123_v24  ;;  %v93_v35 = vmax.f32 %v60_v27, %v77_v28  ;;  %v29_v37 = vld [vmem:[#allocation2 + $0x30] sm:$0xff]  ;;  %v111_v41 = vld [vmem:[#allocation2 + $0x1a8] sm:$0xff] }
  0x1c   :  { %v46_v38 = vld [vmem:[#allocation2 + $0xb0] sm:$0xff]  ;;  %v30_v43 = vld [vmem:[#allocation2 + $0x38] sm:$0xff]  ;;  %140 = vst [vmem:[#allocation5 + $0x10] sm:$0xff] %v124_v34  ;;  %v94_v46 = vmax.f32 %v61_v36, %v78_v33  ;;  %v31_v50 = vld [vmem:[#allocation2 + $0x40] sm:$0xff] }
  0x1d   :  { %v79_v39 = vld [vmem:[#allocation2 + $0x130] sm:$0xff]  ;;  %v125_v40 = vmax.f32 %v92_v30, %v109_v26  ;;  %v62_v42 = vmax.f32 %v29_v37, %v46_v38  ;;  %v47_v44 = vld [vmem:[#allocation2 + $0xb8] sm:$0xff]  ;;  %v126_v45 = vmax.f32 %v93_v35, %v110_v31  ;;  %v48_v53 = vld [vmem:[#allocation2 + $0xc0] sm:$0xff] }
  0x1e   :  { %v112_v47 = vld [vmem:[#allocation2 + $0x1b0] sm:$0xff]  ;;  %v63_v48 = vmax.f32 %v30_v43, %v47_v44  ;;  %v80_v49 = vld [vmem:[#allocation2 + $0x138] sm:$0xff]  ;;  %v81_v54 = vld [vmem:[#allocation2 + $0x140] sm:$0xff]  ;;  %v127_v55 = vmax.f32 %v94_v46, %v111_v41  ;;  %v64_v57 = vmax.f32 %v31_v50, %v48_v53 }
  0x1f   :  { %141 = vst [vmem:[#allocation5 + $0x18] sm:$0xff] %v125_v40  ;;  %v95_v51 = vmax.f32 %v62_v42, %v79_v39  ;;  %v113_v52 = vld [vmem:[#allocation2 + $0x1b8] sm:$0xff]  ;;  %142 = vst [vmem:[#allocation5 + $0x20] sm:$0xff] %v126_v45  ;;  %v32_v58 = vld [vmem:[#allocation2 + $0x48] sm:$0xff] }
  0x20   :  { %v96_v56 = vmax.f32 %v63_v48, %v80_v49  ;;  %v49_v59 = vld [vmem:[#allocation2 + $0xc8] sm:$0xff]  ;;  %v114_v62 = vld [vmem:[#allocation2 + $0x1c0] sm:$0xff]  ;;  %v33_v0 = vld [vmem:[#allocation2 + $0x50] sm:$0xff]  ;;  %143 = vst [vmem:[#allocation5 + $0x28] sm:$0xff] %v127_v55  ;;  %v97_v3 = vmax.f32 %v64_v57, %v81_v54 }
  0x21   :  { %v82_v60 = vld [vmem:[#allocation2 + $0x148] sm:$0xff]  ;;  %v128_v61 = vmax.f32 %v95_v51, %v112_v47  ;;  %v65_v63 = vmax.f32 %v32_v58, %v49_v59  ;;  %v50_v1 = vld [vmem:[#allocation2 + $0xd0] sm:$0xff]  ;;  %v34_v7 = vld [vmem:[#allocation2 + $0x58] sm:$0xff] }
  0x22   :  { %v129_v2 = vmax.f32 %v96_v56, %v113_v52  ;;  %v115_v4 = vld [vmem:[#allocation2 + $0x1c8] sm:$0xff]  ;;  %v66_v5 = vmax.f32 %v33_v0, %v50_v1  ;;  %v83_v6 = vld [vmem:[#allocation2 + $0x150] sm:$0xff]  ;;  %v51_v10 = vld [vmem:[#allocation2 + $0xd8] sm:$0xff]  ;;  %v130_v12 = vmax.f32 %v97_v3, %v114_v62 }
  0x23   :  { %144 = vst [vmem:[#allocation5 + $0x30] sm:$0xff] %v128_v61  ;;  %v98_v8 = vmax.f32 %v65_v63, %v82_v60  ;;  %v116_v9 = vld [vmem:[#allocation2 + $0x1d0] sm:$0xff]  ;;  %v84_v11 = vld [vmem:[#allocation2 + $0x158] sm:$0xff]  ;;  %v67_v14 = vmax.f32 %v34_v7, %v51_v10  ;;  %v35_v15 = vld [vmem:[#allocation2 + $0x60] sm:$0xff] }
  0x24   :  { %145 = vst [vmem:[#allocation5 + $0x38] sm:$0xff] %v129_v2  ;;  %v99_v13 = vmax.f32 %v66_v5, %v83_v6  ;;  %v52_v16 = vld [vmem:[#allocation2 + $0xe0] sm:$0xff]  ;;  %v117_v19 = vld [vmem:[#allocation2 + $0x1d8] sm:$0xff]  ;;  %v36_v21 = vld [vmem:[#allocation2 + $0x68] sm:$0xff] }
  0x25   :  { %v85_v17 = vld [vmem:[#allocation2 + $0x160] sm:$0xff]  ;;  %v131_v18 = vmax.f32 %v98_v8, %v115_v4  ;;  %v68_v20 = vmax.f32 %v35_v15, %v52_v16  ;;  %v53_v22 = vld [vmem:[#allocation2 + $0xe8] sm:$0xff]  ;;  %146 = vst [vmem:[#allocation5 + $0x40] sm:$0xff] %v130_v12  ;;  %v100_v24 = vmax.f32 %v67_v14, %v84_v11  ;;  %v37_v28 = vld [vmem:[#allocation2 + $0x70] sm:$0xff] }
  0x26   :  { %v132_v23 = vmax.f32 %v99_v13, %v116_v9  ;;  %v118_v25 = vld [vmem:[#allocation2 + $0x1e0] sm:$0xff]  ;;  %v69_v26 = vmax.f32 %v36_v21, %v53_v22  ;;  %v86_v27 = vld [vmem:[#allocation2 + $0x168] sm:$0xff]  ;;  %v54_v31 = vld [vmem:[#allocation2 + $0xf0] sm:$0xff] }
  0x27   :  { %147 = vst [vmem:[#allocation5 + $0x48] sm:$0xff] %v131_v18  ;;  %v101_v29 = vmax.f32 %v68_v20, %v85_v17  ;;  %v119_v30 = vld [vmem:[#allocation2 + $0x1e8] sm:$0xff]  ;;  %v87_v32 = vld [vmem:[#allocation2 + $0x170] sm:$0xff]  ;;  %v133_v33 = vmax.f32 %v100_v24, %v117_v19  ;;  %v70_v35 = vmax.f32 %v37_v28, %v54_v31  ;;  %v38_v36 = vld [vmem:[#allocation2 + $0x78] sm:$0xff] }
  0x28   :  { %148 = vst [vmem:[#allocation5 + $0x50] sm:$0xff] %v132_v23  ;;  %v102_v34 = vmax.f32 %v69_v26, %v86_v27  ;;  %v55_v37 = vld [vmem:[#allocation2 + $0xf8] sm:$0xff]  ;;  %v120_v40 = vld [vmem:[#allocation2 + $0x1f0] sm:$0xff] }
  0x29   :  { %v88_v38 = vld [vmem:[#allocation2 + $0x178] sm:$0xff]  ;;  %v134_v39 = vmax.f32 %v101_v29, %v118_v25  ;;  %v71_v41 = vmax.f32 %v38_v36, %v55_v37  ;;  %149 = vst [vmem:[#allocation5 + $0x58] sm:$0xff] %v133_v33  ;;  %v103_v43 = vmax.f32 %v70_v35, %v87_v32 }
  0x2a   :  { %v135_v42 = vmax.f32 %v102_v34, %v119_v30  ;;  %v121_v44 = vld [vmem:[#allocation2 + $0x1f8] sm:$0xff] }
  0x2b   :  { %150 = vst [vmem:[#allocation5 + $0x60] sm:$0xff] %v134_v39  ;;  %v104_v45 = vmax.f32 %v71_v41, %v88_v38  ;;  %v136_v46 = vmax.f32 %v103_v43, %v120_v40 }
  0x2c   :  { %151 = vst [vmem:[#allocation5 + $0x68] sm:$0xff] %v135_v42 }
  0x2d   :  { %v137_v47 = vmax.f32 %v104_v45, %v121_v44  ;;  %152 = vst [vmem:[#allocation5 + $0x70] sm:$0xff] %v136_v46 }
  0x2f   :  { %153 = vst [vmem:[#allocation5 + $0x78] sm:$0xff] %v137_v47 }
  0x30   :  { %208 = shalt.err (!%p205_p12)
}
  0x31   :  { %s209_s24 = scalar_lea.hbm %s268_s1, 2048 }
  0x32   :  { %p210_p13 = scmp.ne.s32.totalorder %s268_s1, %s209_s24  ;;  %p213_p0 = scmp.lt.u32.totalorder %s209_s24, %s268_s1 }
  0x34   :  { %p215_p1 = pnand %p213_p0, %p210_p13 }
  0x36   :  { %218 = shalt.err (!%p215_p1)
}
  0x37   :  { %165 = dma.vmem_to_hbm [thread:$0]  %s160_s20, 2048, %s268_s1, [#allocation4], %s224_s16, %s224_s16, %s225_s17  }
  0x38   :  { %221 = dma.done.wait [#allocation4], 2048  }
  0x39   :  { %222 = vsyncadd [#allocation4], 4294965248 }
  0x3a   :  { %169 = vsyncpa [#allocation3], 1 }
  0x3b   :  { %170 = vsyncpa [#allocation4], 1 }

</bundles_post_ra>
